<compile_context>
chip_gen: v5e
topology: v5e:2x2
jax: 0.10.0
libtpu: 0.0.40
codegen_flags: <defaults>
</compile_context>

<pallas_src>
import functools

import jax
import jax.numpy as jnp
from jax import lax
from jax.experimental import pallas as pl
from jax.experimental.pallas import tpu as pltpu

KERNEL_SIZE = 5        # odd window -> output sequence length == input length
MAX_BATCH_FOLD = 16    # static unroll bound for batch rows folded into one block


def _round_up(n, m):
    return ((n + m - 1) // m) * m


@functools.lru_cache(maxsize=None)
def _roll_matches_jnp():
    """True if pltpu.roll follows the jnp.roll convention (out[i] = x[(i - s) % n]).

    Probed once with a tiny kernel so the edge masks below always pick the right
    shift sign, independent of the convention in the installed jax/libtpu.
    """
    def probe(x_ref, o_ref):
        o_ref[...] = pltpu.roll(x_ref[...], shift=1, axis=0)

    try:
        x = jnp.broadcast_to(lax.iota(jnp.float32, 8)[:, None], (8, 128))
        y = pl.pallas_call(
            probe, out_shape=jax.ShapeDtypeStruct((8, 128), jnp.float32))(x)
        return float(y[0, 0]) != 1.0   # jnp.roll convention -> row 0 becomes old row 7
    except Exception:
        return True


def _vmem_capacity_bytes():
    try:
        info = pltpu.get_tpu_info()
        for name in ("vmem_capacity_bytes", "vmem_size_bytes", "vmem_bytes"):
            cap = getattr(info, name, None)
            if cap:
                return int(cap)
    except Exception:
        pass
    return 64 << 20   # conservative: v7x per-TensorCore physical VMEM


def _series_decomp_kernel(x_ref, res_ref, mean_ref, *, kernel_size, roll_matches_jnp):
    bt, Lp, ct = x_ref.shape
    pad = (kernel_size - 1) // 2
    inv_k = 1.0 / float(kernel_size)

    if pad > 0:
        # Within-sequence row index, hoisted once per block (loop-invariant).
        i_loc = lax.broadcasted_iota(jnp.int32, (Lp, ct), 0)

    # Static unroll over the batch rows folded into this block. Groups are
    # independent, so all rolls stay strictly within one sequence (no cross-batch
    # contamination) and every op is a plain 2-D vreg op.
    for b in range(bt):
        x = x_ref[b].astype(jnp.float32)          # (Lp, ct)

        if pad == 0:
            mean = x
        else:
            # Replicated edge rows (hoisted per group, computed once).
            front = jnp.broadcast_to(x[0:1, :], (Lp, ct))
            end = jnp.broadcast_to(x[Lp - 1:Lp, :], (Lp, ct))

            # AvgPool1d over the edge-replicated sequence: center tap seeds the
            # accumulator; each remaining tap is an XLU roll whose wrapped rows
            # are replaced by the replicated edge row.
            acc = x
            for d in range(1, pad + 1):
                de = d % Lp
                fwd_shift = (Lp - de) % Lp if roll_matches_jnp else de
                bwd_shift = de if roll_matches_jnp else (Lp - de) % Lp
                fwd = pltpu.roll(x, shift=fwd_shift, axis=0)   # ~ x[i + d]
                bwd = pltpu.roll(x, shift=bwd_shift, axis=0)   # ~ x[i - d]
                acc = (acc
                       + jnp.where(i_loc >= Lp - d, end, fwd)
                       + jnp.where(i_loc < d, front, bwd))
            mean = acc * inv_k

        mean_ref[b] = mean.astype(mean_ref.dtype)
        res_ref[b] = (x - mean).astype(res_ref.dtype)


def _pick_tiles(B, Lp, Cp, itemsize, target_bytes, vmem_budget):
    """Choose (batch_fold, channel_tile): full-C contiguous slabs when possible,
    dtype-aware block sizing, >= 4 grid steps, VMEM-budget aware."""
    # Channel tile: prefer the full channel extent (contiguous (Lp, C) slabs per
    # batch row -> best DMA efficiency); fall back to lane-dense sub-tiles only
    # when a single batch row at full C blows well past the per-block target.
    if Lp * Cp * itemsize <= 2 * target_bytes:
        ct = Cp
    else:
        ct = 128
        t = 256
        while t <= Cp:
            if Cp % t == 0 and Lp * t * itemsize <= 2 * target_bytes:
                ct = t
            t += 128
    n_ct = Cp // ct

    row_bytes = Lp * ct * itemsize
    bt = max(1, min(B, MAX_BATCH_FOLD, target_bytes // row_bytes))

    # Keep at least ~4 grid steps when the problem size allows: both grid axes
    # are "parallel", so this feeds both v7x TensorCores and leaves the DMA
    # pipeline something to overlap.
    while bt > 1 and pl.cdiv(B, bt) * n_ct < 4:
        bt = max(1, bt // 2)

    def est(bt_, ct_):
        io = bt_ * Lp * ct_ * itemsize      # one input + two output blocks, x2 buffers
        f32 = Lp * ct_ * 4                  # per-group f32 temporaries (not x bt)
        return 6 * io + 10 * f32

    while est(bt, ct) > vmem_budget:
        if bt > 1:
            bt = max(1, bt // 2)
        elif ct > 128:
            ct = 128
        else:
            # TODO(synk): halo-tile the sequence axis for very long L so a single
            # (Lp, 128) slab can shrink further without losing double-buffering.
            break
    return int(bt), int(ct), int(est(bt, ct))


def series_decomp(x, kernel_size=KERNEL_SIZE):
    """Returns (res, moving_mean), both shaped like x = (B, L, C)."""
    assert kernel_size % 2 == 1, "kernel_size must be odd (matches the module's usage)"
    B, L, C = x.shape
    itemsize = x.dtype.itemsize

    # Wrapper-side layout plumbing (only when needed):
    #  * pad L to a multiple of 8 with edge replication (clamp semantics preserved),
    #  * pad C to a multiple of 128 with zeros (lane-dense, unmasked vst stores).
    Lp = _round_up(L, 8)
    Cp = _round_up(C, 128)
    xp = x
    if Lp != L:
        xp = jnp.pad(xp, ((0, 0), (0, Lp - L), (0, 0)), mode="edge")
    if Cp != C:
        xp = jnp.pad(xp, ((0, 0), (0, 0), (0, Cp - C)))

    vmem_cap = _vmem_capacity_bytes()
    # ~2 MiB blocks on 64 MiB-VMEM parts (v7x), ~4 MiB where there is headroom
    # (v5e/v6e 128 MiB): well into the measured >=85%-of-HBM-roofline regime
    # while leaving room for double-buffered in/out blocks + f32 temporaries.
    target_bytes = (4 << 20) if vmem_cap >= (96 << 20) else (2 << 20)
    vmem_budget = min(vmem_cap - (8 << 20), 48 << 20)

    bt, ct, est = _pick_tiles(B, Lp, Cp, itemsize, target_bytes, vmem_budget)
    vmem_limit = int(max(32 << 20, min(est * 5 // 4, vmem_cap - (4 << 20))))

    grid = (pl.cdiv(B, bt), Cp // ct)
    block = (bt, Lp, ct)
    idx = lambda bi, ci: (bi, 0, ci)

    kern = functools.partial(
        _series_decomp_kernel,
        kernel_size=kernel_size,
        roll_matches_jnp=_roll_matches_jnp(),
    )
    res, mean = pl.pallas_call(
        kern,
        out_shape=(
            jax.ShapeDtypeStruct((B, Lp, Cp), x.dtype),
            jax.ShapeDtypeStruct((B, Lp, Cp), x.dtype),
        ),
        grid=grid,
        in_specs=[pl.BlockSpec(block, idx)],
        out_specs=(
            pl.BlockSpec(block, idx),
            pl.BlockSpec(block, idx),
        ),
        compiler_params=pltpu.CompilerParams(
            dimension_semantics=("parallel", "parallel"),
            vmem_limit_bytes=vmem_limit,
        ),
    )(xp)

    if Lp != L or Cp != C:
        res = res[:, :L, :C]
        mean = mean[:, :L, :C]
    return res, mean


def _reference_series_decomp(x, kernel_size=KERNEL_SIZE):
    # Pure-JAX reference mirroring the PyTorch module exactly.
    pad = (kernel_size - 1) // 2
    front = jnp.repeat(x[:, 0:1, :], pad, axis=1)
    end = jnp.repeat(x[:, -1:, :], pad, axis=1)
    xp = jnp.concatenate([front, x, end], axis=1)           # (B, L + 2p, C)
    L = x.shape[1]
    windows = jnp.stack([xp[:, t:t + L, :] for t in range(kernel_size)], axis=0)
    mean = jnp.mean(windows, axis=0)
    return x - mean, mean


def _check(x, kernel_size=KERNEL_SIZE, atol=1e-5):
    res, mean = series_decomp(x, kernel_size)
    res = jax.block_until_ready(res)
    mean = jax.block_until_ready(mean)
    res_ref, mean_ref = _reference_series_decomp(x, kernel_size)
    assert res.shape == x.shape and mean.shape == x.shape
    assert jnp.allclose(mean, mean_ref, atol=atol), "mean mismatch"
    assert jnp.allclose(res, res_ref, atol=atol), "res mismatch"


if __name__ == "__main__":
    key = jax.random.PRNGKey(0)

    # Aligned demo shape: lane-dense channels, sequence a multiple of 8.
    k1, k2 = jax.random.split(key)
    x1 = jax.random.normal(k1, (4, 48, 128), dtype=jnp.float32)
    _check(x1)

    # Ragged shape: exercises batch folding (bt > 1), edge-padded L (44 -> 48)
    # and zero-padded C (96 -> 128) plus the output slicing.
    x2 = jax.random.normal(k2, (16, 44, 96), dtype=jnp.float32)
    _check(x2)

    print("KERNEL_OK")
</pallas_src>

<mosaic_0001>
module attributes {stable_mosaic.version = 11 : i64} {
  func.func @probe(%arg0: memref<8x128xf32, #tpu.memory_space<vmem>>, %arg1: memref<8x128xf32, #tpu.memory_space<vmem>>) attributes {dimension_semantics = [], scalar_prefetch = 0 : i64, scratch_operands = 0 : i64, tpu.core_type = #tpu.core_type<tc>} {
    %c0 = arith.constant 0 : index
    %c0_0 = arith.constant 0 : index
    %0 = vector.load %arg0[%c0, %c0_0] : memref<8x128xf32, #tpu.memory_space<vmem>>, vector<8x128xf32>
    %c1_i32 = arith.constant 1 : i32
    %1 = tpu.dynamic_rotate %0 by %c1_i32 dim 0 : vector<8x128xf32>, i32 -> vector<8x128xf32>
    %c0_1 = arith.constant 0 : index
    %c0_2 = arith.constant 0 : index
    %2 = vector.load %arg1[%c0_1, %c0_2] : memref<8x128xf32, #tpu.memory_space<vmem>>, vector<8x128xf32>
    tpu.vector_store %arg1[%c0_1, %c0_2], %1 {strides = array<i32>} : memref<8x128xf32, #tpu.memory_space<vmem>>, vector<8x128xf32>,
    return
  }
}

module attributes {stable_mosaic.version = 11 : i64} {
  func.func @_series_decomp_kernel(%arg0: i32, %arg1: i32, %arg2: memref<1x48x128xf32, #tpu.memory_space<vmem>>, %arg3: memref<1x48x128xf32, #tpu.memory_space<vmem>>, %arg4: memref<1x48x128xf32, #tpu.memory_space<vmem>>) attributes {dimension_semantics = [#tpu.dimension_semantics<parallel>, #tpu.dimension_semantics<parallel>], iteration_bounds = array<i64: 4, 1>, scalar_prefetch = 0 : i64, scratch_operands = 0 : i64, tpu.core_type = #tpu.core_type<tc>, window_params = [{transform_indices = @transform_0, window_bounds = array<i64: 1, 48, 128>}, {transform_indices = @transform_1, window_bounds = array<i64: 1, 48, 128>}, {transform_indices = @transform_2, window_bounds = array<i64: 1, 48, 128>}]} {
    %0 = tpu.iota {dimensions = array<i32: 0>} : vector<48x128xi32>
    %c0 = arith.constant 0 : index
    %c0_0 = arith.constant 0 : index
    %c0_1 = arith.constant 0 : index
    %1 = vector.load %arg2[%c0, %c0_0, %c0_1] : memref<1x48x128xf32, #tpu.memory_space<vmem>>, vector<1x48x128xf32>
    %2 = vector.shape_cast %1 : vector<1x48x128xf32> to vector<48x128xf32>
    %3 = vector.extract_strided_slice %2 {offsets = [0, 0], sizes = [1, 128], strides = [1, 1]} : vector<48x128xf32> to vector<1x128xf32>
    %4 = vector.shape_cast %3 : vector<1x128xf32> to vector<1x128xf32>
    %5 = vector.broadcast %4 : vector<1x128xf32> to vector<48x128xf32>
    %6 = vector.extract_strided_slice %2 {offsets = [47, 0], sizes = [1, 128], strides = [1, 1]} : vector<48x128xf32> to vector<1x128xf32>
    %7 = vector.shape_cast %6 : vector<1x128xf32> to vector<1x128xf32>
    %8 = vector.broadcast %7 : vector<1x128xf32> to vector<48x128xf32>
    %c47_i32 = arith.constant 47 : i32
    %9 = tpu.dynamic_rotate %2 by %c47_i32 dim 0 : vector<48x128xf32>, i32 -> vector<48x128xf32>
    %c1_i32 = arith.constant 1 : i32
    %10 = tpu.dynamic_rotate %2 by %c1_i32 dim 0 : vector<48x128xf32>, i32 -> vector<48x128xf32>
    %c47_i32_2 = arith.constant 47 : i32
    %11 = vector.broadcast %c47_i32_2 : i32 to vector<48x128xi32>
    %12 = arith.cmpi sge, %0, %11 : vector<48x128xi32>
    %13 = arith.select %12, %8, %9 : vector<48x128xi1>, vector<48x128xf32>
    %14 = arith.addf %2, %13 : vector<48x128xf32>
    %c1_i32_3 = arith.constant 1 : i32
    %15 = vector.broadcast %c1_i32_3 : i32 to vector<48x128xi32>
    %16 = arith.cmpi slt, %0, %15 : vector<48x128xi32>
    %17 = arith.select %16, %5, %10 : vector<48x128xi1>, vector<48x128xf32>
    %18 = arith.addf %14, %17 : vector<48x128xf32>
    %c46_i32 = arith.constant 46 : i32
    %19 = tpu.dynamic_rotate %2 by %c46_i32 dim 0 : vector<48x128xf32>, i32 -> vector<48x128xf32>
    %c2_i32 = arith.constant 2 : i32
    %20 = tpu.dynamic_rotate %2 by %c2_i32 dim 0 : vector<48x128xf32>, i32 -> vector<48x128xf32>
    %c46_i32_4 = arith.constant 46 : i32
    %21 = vector.broadcast %c46_i32_4 : i32 to vector<48x128xi32>
    %22 = arith.cmpi sge, %0, %21 : vector<48x128xi32>
    %23 = arith.select %22, %8, %19 : vector<48x128xi1>, vector<48x128xf32>
    %24 = arith.addf %18, %23 : vector<48x128xf32>
    %c2_i32_5 = arith.constant 2 : i32
    %25 = vector.broadcast %c2_i32_5 : i32 to vector<48x128xi32>
    %26 = arith.cmpi slt, %0, %25 : vector<48x128xi32>
    %27 = arith.select %26, %5, %20 : vector<48x128xi1>, vector<48x128xf32>
    %28 = arith.addf %24, %27 : vector<48x128xf32>
    %cst = arith.constant 2.000000e-01 : f32
    %29 = vector.broadcast %cst : f32 to vector<48x128xf32>
    %30 = arith.mulf %28, %29 : vector<48x128xf32>
    %c0_6 = arith.constant 0 : index
    %c0_7 = arith.constant 0 : index
    %c0_8 = arith.constant 0 : index
    %31 = vector.load %arg4[%c0_6, %c0_7, %c0_8] : memref<1x48x128xf32, #tpu.memory_space<vmem>>, vector<1x48x128xf32>
    %32 = vector.shape_cast %31 : vector<1x48x128xf32> to vector<48x128xf32>
    %33 = vector.shape_cast %30 : vector<48x128xf32> to vector<1x48x128xf32>
    tpu.vector_store %arg4[%c0_6, %c0_7, %c0_8], %33 {strides = array<i32>} : memref<1x48x128xf32, #tpu.memory_space<vmem>>, vector<1x48x128xf32>,
    %34 = arith.subf %2, %30 : vector<48x128xf32>
    %c0_9 = arith.constant 0 : index
    %c0_10 = arith.constant 0 : index
    %c0_11 = arith.constant 0 : index
    %35 = vector.load %arg3[%c0_9, %c0_10, %c0_11] : memref<1x48x128xf32, #tpu.memory_space<vmem>>, vector<1x48x128xf32>
    %36 = vector.shape_cast %35 : vector<1x48x128xf32> to vector<48x128xf32>
    %37 = vector.shape_cast %34 : vector<48x128xf32> to vector<1x48x128xf32>
    tpu.vector_store %arg3[%c0_9, %c0_10, %c0_11], %37 {strides = array<i32>} : memref<1x48x128xf32, #tpu.memory_space<vmem>>, vector<1x48x128xf32>,
    return
  }
  func.func @transform_0(%arg0: i32, %arg1: i32) -> (i32, i32, i32) {
    %c0_i32 = arith.constant 0 : i32
    %c0_i32_0 = arith.constant 0 : i32
    return %arg0, %c0_i32, %arg1 : i32, i32, i32
  }
  func.func @transform_1(%arg0: i32, %arg1: i32) -> (i32, i32, i32) {
    %c0_i32 = arith.constant 0 : i32
    %c0_i32_0 = arith.constant 0 : i32
    return %arg0, %c0_i32, %arg1 : i32, i32, i32
  }
  func.func @transform_2(%arg0: i32, %arg1: i32) -> (i32, i32, i32) {
    %c0_i32 = arith.constant 0 : i32
    %c0_i32_0 = arith.constant 0 : i32
    return %arg0, %c0_i32, %arg1 : i32, i32, i32
  }
}

</mosaic_0001>

<bundles_post_ra>
// kernel: tpu_custom_call.1
= control target key start
LH: loop header
LB: loop body
LE: loop exit
PB: predicated region body
PF: predicated region fallthrough
CT: control target
= control target key end

     0   :  { %6 = vsyncpa [#allocation3], 0  ;;  %s115_s0 = inlined_call_operand.hbm [shape: f32[8,128], index: 0, kind: input, shape index: {}]   ;;  %s116_s1 = inlined_call_operand.hbm [shape: f32[8,128], index: 1, kind: output, shape index: {}]  }
   0x1   :  { %7 = vsyncpa [#allocation4], 0  ;;  %s13_s8 = sshll.u32 %s115_s0, 4  ;;  %s97_s9 = smov [#allocation2]   ;;  %s14_s8 = int_to_ptr.hbm [resolvable:$true] %s13_s8 }
   0x2   :  { %s15_s10 = sshll.u32 %s97_s9, 4  ;;  %s16_s10 = int_to_ptr.vmem [resolvable:$true] %s15_s10 }
   0x3   :  { %18 = dma.hbm_to_vmem [thread:$0]  %s14_s8, 128, %s16_s10, [#allocation3]  }
   0x4   :  { %93 = dma.done.wait [#allocation3], 128  }
   0x5   :  { %94 = vsyncadd [#allocation3], 4294967168  ;;  %s98_s11 = smov [#allocation5]   ;;  %s33_s15 = sshll.u32 %s116_s1, 4  ;;  %v23_v0 = vld [vmem:[#allocation2] sm:$0xff]  ;;  %s34_s15 = int_to_ptr.hbm [resolvable:$true] %s33_s15 }
   0x6   :  { %s31_s12 = sshll.u32 %s98_s11, 4  ;;  %v24_v1 = vrot.slane %v23_v0, 7  ;;  %s32_s12 = int_to_ptr.vmem [resolvable:$true] %s31_s12 }
   0x8   :  { %25 = vst [vmem:[#allocation5] sm:$0xff] %v24_v1 }
   0x9   :  { %36 = dma.vmem_to_hbm [thread:$0]  %s32_s12, 128, %s34_s15, [#allocation4]  }
   0xa   :  { %95 = dma.done.wait [#allocation4], 128  }
   0xb   :  { %96 = vsyncadd [#allocation4], 4294967168 }
   0xc   :  { %41 = vsyncpa [#allocation3], 1 }
   0xd   :  { %42 = vsyncpa [#allocation4], 1 }

// kernel: tpu_custom_call.1
= control target key start
LH: loop header
LB: loop body
LE: loop exit
PB: predicated region body
PF: predicated region fallthrough
CT: control target
= control target key end

     0   :  { %8 = vsyncpa [#allocation3], 0  ;;  %s1070_s0 = inlined_call_operand.hbm [shape: f32[4,48,128], index: 0, kind: input, shape index: {}]   ;;  %s1071_s1 = inlined_call_operand.hbm [shape: f32[4,48,128], index: 1, kind: output, shape index: {0}]   ;;  %s1072_s2 = inlined_call_operand.hbm [shape: f32[4,48,128], index: 2, kind: output, shape index: {1}]  }
   0x1   :  { %10 = vsyncpa [#allocation3 + $0x1], 0 }
   0x2   :  { %11 = vsyncpa [#allocation4], 0 }
   0x3   :  { %13 = vsyncpa [#allocation4 + $0x1], 0 }
   0x4   :  { %14 = vsyncpa [#allocation7], 0 }
   0x5   :  { %16 = vsyncpa [#allocation7 + $0x1], 0  ;;  %s766_s9 = smov 0   ;;  %s768_s10 = smov 0  }
   0x6   :  { %s770_s11 = smov 0   ;;  %s772_s12 = smov 0  }
   0x7   :  { %s774_s13 = smov 0   ;;  %s776_s14 = smov 0  }
   0x8 LB: > { %s515_s15 = sadd.s32 4294967295, %s745_s14   ;;  %s516_s16 = sadd.s32 4294967294, %s745_s14   ;;  %s745_s14 = sphi %s776_s14, %s22_s14   ;;  %s741_s13 = sphi %s774_s13, %s1081_s13   ;;  %s737_s12 = sphi %s772_s12, %s1080_s12   ;;  %s733_s11 = sphi %s770_s11, %s1079_s11   ;;  %s729_s10 = sphi %s768_s10, %s1078_s10   ;;  %s725_s9 = sphi %s766_s9, %s1077_s9  }
   0x9   : > { %s34_s17 = sadd.s32 1, %s741_s13  ;;  %s43_s18 = sadd.s32 1, %s733_s11 }
   0xa   : > { %p36_p0 = scmp.ge.s32.totalorder %s34_s17, 4  ;;  %p50_p1 = scmp.ne.s32.totalorder %s733_s11, %s729_s10 }
   0xb   : > { %p51_p2 = scmp.eq.s32.totalorder %s745_s14, 0  ;;  %p56_p3 = scmp.ne.s32.totalorder %s729_s10, %s725_s9 }
   0xc   : > { %s1083_s17 = smov (%p36_p0, %s34_s17), 0  ;;  %p57_p5 = scmp.eq.s32.totalorder %s515_s15, 0 }
   0xd   : > { %p807_p4 = por %p51_p2, %p50_p1  ;;  %s38_s20 = ssub.s32 %s741_s13, %s1083_s17 }
   0xe   : > { %p82_p6 = scmp.eq.s32.totalorder %s515_s15, 3  ;;  %p41_p7 = scmp.eq.s32.totalorder %s38_s20, 0 }
   0xf   : > { %p813_p8 = por %p57_p5, %p56_p3  ;;  %p88_p10 = scmp.eq.s32.totalorder %s516_s16, 3 }
  0x10   : > { %p817_p9 = por %p82_p6, %p50_p1  ;;  %p547_p12 = scmp.lt.s32.totalorder %s745_s14, 4 }
  0x11   : > { %s822_s23 = scalar_select %p41_p7, %s733_s11, %s43_s18  }
  0x12   : > { %p824_p11 = por %p88_p10, %p56_p3  ;;  %s136_s25 = sand.u32 1, %s733_s11  }
  0x13   : > { %s525_s26 = smul.u32 48, %s136_s25  ;;  %p537_p13 = pnand %p547_p12, %p807_p4 }
  0x14   : > { %s526_s27 = smul.u32 48, %s741_s13  ;;  %p520_p0 = scmp.ge.s32.totalorder %s745_s14, 1 }
  0x15   : > { %s140_s3 = scalar_lea.vmem [#allocation2], %s525_s26  ;;  %s137_s6 = scalar_lea.sflag [#allocation3], %s136_s25 }
  0x16   : > { %s146_s30 = scalar_lea.hbm %s1070_s0, %s526_s27  ;;  %s149_s4 = sshll.u32 %s140_s3, 4  ;;  %s150_s4 = int_to_ptr.vmem [resolvable:$true] %s149_s4 }
  0x17   : > { %s147_s5 = sshll.u32 %s146_s30, 4  ;;  %s747_s7 = smov 128   ;;  %s148_s5 = int_to_ptr.hbm [resolvable:$true] %s147_s5 }
  0x18   : > { %s748_s8 = smov 8   ;;  %p157_p1 = scmp.lt.s32.totalorder %s745_s14, 5 }
  0x19   : > { %539 = dma.hbm_to_vmem [thread:$0]  (!%p537_p13), %s148_s5, 768, %s150_s4, %s137_s6, %s747_s7, %s747_s7, %s748_s8  }
  0x1a   : > { %p158_p2 = pnand %p520_p0, %p157_p1 }
  0x1b   : > { %s839_s15 = sand.u32 (!%p158_p2), 1, %s729_s10  }
  0x1c   : > { %161 = sbr.rel (%p158_p2) target bundleno = 81 (0x51), region = 24  ;;  %s164_s18 = scalar_lea.sflag (!%p158_p2), [#allocation3], %s839_s15 }
  0x1d   : > { %s842_s16 = smul.u32 (!%p158_p2), 48, %s839_s15 }
  0x1f   : > { %s846_s19 = scalar_lea.vmem (!%p158_p2), [#allocation2], %s842_s16 }
  0x21   : > { %712 = dma.done.wait (%p813_p8), %s164_s18, 768  }
  0x22   : > { %714 = vsyncadd (%p813_p8), %s164_s18, 4294966528  ;;  %v194_v0 = vlaneseq  ;;  %v856_v2 = vld [vmem:[%s846_s19] sm:$0xff]  ;;  %v859_v3 = vld [vmem:[%s846_s19 + $0x8] sm:$0xff]  ;;  %s951_s20 = scalar_lea.vmem [#allocation6], %s842_s16  ;;  %s528_s21 = smul.u32 48, %s737_s12 }
  0x23   : > { %v868_v5 = vld [vmem:[%s846_s19 + $0x28] sm:$0xff]  ;;  %v207_v6 = vperm.slane %v856_v2, 0  ;;  %v209_v7 = vrot.slane %v856_v2, 1  ;;  %v210_v8 = vrot.slane %v859_v3, 1  ;;  %v222_v9 = vrot.slane %v856_v2, 7  ;;  %v875_v10 = vld [vmem:[%s846_s19 + $0x10] sm:$0xff] }
  0x24   : > { %v852_v1 = vshrl.u32 %v194_v0, 7  ;;  %v227_v11 = vrot.slane %v868_v5, 7  ;;  %v270_v12 = vrot.slane %v856_v2, 2  ;;  %v271_v13 = vrot.slane %v859_v3, 2  ;;  %v899_v23 = vld [vmem:[%s846_s19 + $0x18] sm:$0xff]  ;;  %v912_v28 = vld [vmem:[%s846_s19 + $0x20] sm:$0xff]  ;;  %s391_s27 = scalar_lea.hbm %s1072_s2, %s528_s21  ;;  %s373_s3 = scalar_lea.hbm %s1071_s1, %s528_s21 }
  0x25   : > { %v283_v14 = vrot.slane %v856_v2, 6  ;;  %v288_v16 = vrot.slane %v868_v5, 6  ;;  %v211_v17 = vrot.slane %v875_v10, 1  ;;  %v223_v18 = vrot.slane %v859_v3, 7  ;;  %s989_s12 = scalar_lea.vmem [#allocation5], %s842_s16  ;;  %s392_s28 = sshll.u32 %s951_s20, 4  ;;  %s1009_s28 = int_to_ptr.vmem [resolvable:$true] %s392_s28 }
  0x26   : > { %vm215_vm0 = vcmp.lt.s32.totalorder %v852_v1, 7  ;;  %vm228_vm1 = vcmp.lt.s32.totalorder %v852_v1, 1  ;;  %vm276_vm2 = vcmp.lt.s32.totalorder %v852_v1, 6  ;;  %vm289_vm3 = vcmp.lt.s32.totalorder %v852_v1, 2  ;;  %s374_s4 = sshll.u32 %s989_s12, 4  ;;  %s394_s5 = sshll.u32 %s391_s27, 4  ;;  %s395_s5 = int_to_ptr.hbm [resolvable:$true] %s394_s5  ;;  %s1014_s4 = int_to_ptr.vmem [resolvable:$true] %s374_s4 }
  0x27   : > { %v865_v4 = vadd.s32 40, %v852_v1  ;;  %v220_v15 = vsel %vm215_vm0, %v209_v7, %v210_v8  ;;  %v234_v19 = vsel %vm228_vm1, %v227_v11, %v222_v9  ;;  %v281_v21 = vsel %vm276_vm2, %v270_v12, %v271_v13  ;;  %s376_s6 = sshll.u32 %s373_s3, 4  ;;  %s361_s7 = scalar_lea.sflag [#allocation7], %s839_s15  ;;  %s1019_s6 = int_to_ptr.hbm [resolvable:$true] %s376_s6 }
  0x28   : > { %v247_v20 = vadd.f32 %v220_v15, %v856_v2  ;;  %v272_v22 = vrot.slane %v875_v10, 2  ;;  %v258_v24 = vsel %vm228_vm1, %v207_v6, %v234_v19  ;;  %v295_v25 = vsel %vm289_vm3, %v288_v16, %v283_v14  ;;  %s645_s8 = sshra.s32 %s395_s5, 4  ;;  %s651_s21 = scalar_lea.hbm %s1072_s2, 192  ;;  %s646_s8 = int_to_ptr.hbm [resolvable:$true] %s645_s8 }
  0x29   : > { %v219_v26 = vsel %vm215_vm0, %v210_v8, %v211_v17  ;;  %v233_v27 = vsel %vm228_vm1, %v222_v9, %v223_v18  ;;  %v319_v30 = vsel %vm289_vm3, %v207_v6, %v295_v25  ;;  %v284_v33 = vrot.slane %v859_v3, 6  ;;  %s647_s16 = scalar_lea.hbm %s646_s8, 48  ;;  %p652_p6 = scmp.lt.s32.totalorder %s646_s8, %s1072_s2 }
  0x2a   : > { %v264_v29 = vadd.f32 %v258_v24, %v247_v20  ;;  %v248_v31 = vadd.f32 %v219_v26, %v859_v3  ;;  %v280_v32 = vsel %vm276_vm2, %v271_v13, %v272_v22  ;;  %v212_v34 = vrot.slane %v899_v23, 1  ;;  %p648_p3 = scmp.ne.s32.totalorder %s646_s8, %s647_s16  ;;  %p653_p7 = scmp.lt.s32.totalorder %s651_s21, %s647_s16 }
  0x2b   : > { %v224_v35 = vrot.slane %v875_v10, 7  ;;  %v273_v36 = vrot.slane %v899_v23, 2  ;;  %vm240_vm4 = vcmp.ge.s32.totalorder %v865_v4, 47  ;;  %v285_v39 = vrot.slane %v875_v10, 6 }
  0x2c   : > { %v308_v37 = vadd.f32 %v281_v21, %v264_v29  ;;  %v265_v38 = vadd.f32 %v248_v31, %v233_v27  ;;  %v213_v40 = vrot.slane %v912_v28, 1  ;;  %v294_v41 = vsel %vm289_vm3, %v283_v14, %v284_v33  ;;  %p649_p4 = pnand %p648_p3, %p817_p9  ;;  %p654_p8 = por %p653_p7, %p652_p6 }
  0x2d   : > { %v218_v42 = vsel %vm215_vm0, %v211_v17, %v212_v34  ;;  %v232_v43 = vsel %vm228_vm1, %v223_v18, %v224_v35  ;;  %v279_v44 = vsel %vm276_vm2, %v272_v22, %v273_v36  ;;  %v293_v48 = vsel %vm289_vm3, %v284_v33, %v285_v39 }
  0x2e   : > { %v325_v45 = vadd.f32 %v319_v30, %v308_v37  ;;  %v309_v46 = vadd.f32 %v280_v32, %v265_v38  ;;  %v249_v47 = vadd.f32 %v218_v42, %v875_v10  ;;  %v217_v49 = vsel %vm215_vm0, %v212_v34, %v213_v40  ;;  %p650_p5 = pneg %p649_p4 }
  0x2f   : > { %v225_v50 = vrot.slane %v899_v23, 7  ;;  %v274_v51 = vrot.slane %v912_v28, 2  ;;  %v286_v52 = vrot.slane %v899_v23, 6  ;;  %v250_v56 = vadd.f32 %v217_v49, %v899_v23 }
  0x30   : > { %v331_v53 = vmul.f32 0.2, %v325_v45  ;;  %v326_v54 = vadd.f32 %v309_v46, %v294_v41  ;;  %v266_v55 = vadd.f32 %v249_v47, %v232_v43  ;;  %v214_v60 = vrot.slane %v868_v5, 1  ;;  %p655_p10 = pnand %p654_p8, %p650_p5 }
  0x31   : > { %v231_v57 = vsel %vm228_vm1, %v224_v35, %v225_v50  ;;  %v278_v58 = vsel %vm276_vm2, %v273_v36, %v274_v51  ;;  %v292_v59 = vsel %vm289_vm3, %v285_v39, %v286_v52  ;;  %v226_v0 = vrot.slane %v912_v28, 7 }
  0x32   : > { %337 = vst [vmem:[%s951_s20] sm:$0xff] %v331_v53  ;;  %v332_v61 = vmul.f32 0.2, %v326_v54  ;;  %v310_v62 = vadd.f32 %v279_v44, %v266_v55  ;;  %v267_v63 = vadd.f32 %v250_v56, %v231_v57  ;;  %v216_v6 = vsel %vm215_vm0, %v213_v40, %v214_v60 }
  0x33   : > { %v275_v8 = vrot.slane %v868_v5, 2  ;;  %v287_v9 = vrot.slane %v912_v28, 6  ;;  %v208_v13 = vperm.slane %v868_v5, 7  ;;  %v230_v17 = vsel %vm228_vm1, %v225_v50, %v226_v0 }
  0x34   : > { %338 = vst [vmem:[%s951_s20 + $0x8] sm:$0xff] %v332_v61  ;;  %v327_v14 = vadd.f32 %v310_v62, %v293_v48  ;;  %v311_v15 = vadd.f32 %v278_v58, %v267_v63  ;;  %v251_v18 = vadd.f32 %v216_v6, %v912_v28  ;;  %v221_v20 = vsel %vm215_vm0, %v214_v60, %v209_v7 }
  0x35   : > { %v277_v19 = vsel %vm276_vm2, %v274_v51, %v275_v8  ;;  %v229_v21 = vsel %vm228_vm1, %v226_v0, %v227_v11  ;;  %vm301_vm5 = vcmp.ge.s32.totalorder %v865_v4, 46  ;;  %v246_v26 = vsel %vm240_vm4, %v208_v13, %v221_v20 }
  0x36   : > { %v333_v22 = vmul.f32 0.2, %v327_v14  ;;  %v328_v24 = vadd.f32 %v311_v15, %v292_v59  ;;  %v268_v25 = vadd.f32 %v251_v18, %v230_v17  ;;  %v291_v7 = vsel %vm289_vm3, %v286_v52, %v287_v9 }
  0x37   : > { %v252_v27 = vadd.f32 %v246_v26, %v868_v5  ;;  %v282_v11 = vsel %vm276_vm2, %v275_v8, %v270_v12  ;;  %v343_v29 = vsub.f32 %v856_v2, %v331_v53  ;;  %v344_v4 = vsub.f32 %v859_v3, %v332_v61 }
  0x38   : > { %339 = vst [vmem:[%s951_s20 + $0x10] sm:$0xff] %v333_v22  ;;  %v334_v30 = vmul.f32 0.2, %v328_v24  ;;  %v312_v31 = vadd.f32 %v277_v19, %v268_v25  ;;  %v307_v32 = vsel %vm301_vm5, %v208_v13, %v282_v11  ;;  %v345_v34 = vsub.f32 %v875_v10, %v333_v22 }
  0x39   : > { %v269_v33 = vadd.f32 %v252_v27, %v229_v21  ;;  %349 = vst [vmem:[%s989_s12] sm:$0xff] %v343_v29  ;;  %v290_v3 = vsel %vm289_vm3, %v287_v9, %v288_v16 }
  0x3a   : > { %340 = vst [vmem:[%s951_s20 + $0x18] sm:$0xff] %v334_v30  ;;  %v329_v2 = vadd.f32 %v312_v31, %v291_v7  ;;  %v346_v12 = vsub.f32 %v899_v23, %v334_v30 }
  0x3b   : > { %v313_v35 = vadd.f32 %v307_v32, %v269_v33  ;;  %350 = vst [vmem:[%s989_s12 + $0x8] sm:$0xff] %v344_v4 }
  0x3c   : > { %v335_v10 = vmul.f32 0.2, %v329_v2  ;;  %351 = vst [vmem:[%s989_s12 + $0x10] sm:$0xff] %v345_v34 }
  0x3d   : > { %v330_v36 = vadd.f32 %v313_v35, %v290_v3  ;;  %352 = vst [vmem:[%s989_s12 + $0x18] sm:$0xff] %v346_v12 }
  0x3e   : > { %341 = vst [vmem:[%s951_s20 + $0x20] sm:$0xff] %v335_v10  ;;  %v347_v1 = vsub.f32 %v912_v28, %v335_v10 }
  0x3f   : > { %v336_v16 = vmul.f32 0.2, %v330_v36 }
  0x40   : > { %353 = vst [vmem:[%s989_s12 + $0x20] sm:$0xff] %v347_v1 }
  0x41   : > { %342 = vst [vmem:[%s951_s20 + $0x28] sm:$0xff] %v336_v16  ;;  %v348_v23 = vsub.f32 %v868_v5, %v336_v16 }
  0x42   : > { %658 = shalt.err (!%p655_p10)
}
  0x43   : > { %s749_s20 = smov 128   ;;  %s750_s27 = smov 8   ;;  %354 = vst [vmem:[%s989_s12 + $0x28] sm:$0xff] %v348_v23 }
  0x44   : > { %533 = dma.vmem_to_hbm [thread:$0]  (%p817_p9), %s1009_s28, 768, %s395_s5, %s361_s7, %s749_s20, %s749_s20, %s750_s27  }
  0x45   : > { %s356_s29 = scalar_lea.sflag [#allocation4], %s839_s15  ;;  %s673_s30 = sshra.s32 %s1019_s6, 4  ;;  %s674_s30 = int_to_ptr.hbm [resolvable:$true] %s673_s30 }
  0x46   : > { %s675_s3 = scalar_lea.hbm %s674_s30, 48  ;;  %s679_s18 = scalar_lea.hbm %s1071_s1, 192 }
  0x47   : > { %p676_p12 = scmp.ne.s32.totalorder %s674_s30, %s675_s3  ;;  %p680_p1 = scmp.lt.s32.totalorder %s674_s30, %s1071_s1 }
  0x48   : > { %p681_p2 = scmp.lt.s32.totalorder %s679_s18, %s675_s3 }
  0x49   : > { %p677_p13 = pnand %p676_p12, %p817_p9 }
  0x4a   : > { %p682_p3 = por %p681_p2, %p680_p1 }
  0x4b   : > { %p678_p0 = pneg %p677_p13 }
  0x4d   : > { %p683_p4 = pnand %p682_p3, %p678_p0 }
  0x4f   : > { %686 = shalt.err (!%p683_p4)
}
  0x50   : > { %532 = dma.vmem_to_hbm [thread:$0]  (%p817_p9), %s1014_s4, 768, %s1019_s6, %s356_s29, %s749_s20, %s749_s20, %s750_s27  }
  0x51 PF: > { %p548_p5 = scmp.ge.s32.totalorder %s745_s14, 2  ;;  %s409_s15 = sand.u32 1, %s725_s9  }
  0x52   : > { %s410_s12 = scalar_lea.sflag [#allocation4], %s409_s15 }
  0x53   : > { %p541_p6 = pnand %p548_p5, %p824_p11 }
  0x55   : > { %p542_p7 = pneg %p541_p6 }
  0x57   : > { %716 = dma.done.wait (%p542_p7), %s410_s12, 768  }
  0x58   : > { %718 = vsyncadd (%p542_p7), %s410_s12, 4294966528  ;;  %s420_s28 = scalar_lea.sflag [#allocation7], %s409_s15 }
  0x59   : > { %720 = dma.done.wait (%p542_p7), %s420_s28, 768  }
  0x5a   : > { %722 = vsyncadd (%p542_p7), %s420_s28, 4294966528  ;;  %s22_s14 = sadd.s32 1, %s745_s14   ;;  %s1077_s9 = smov %s729_s10 }
  0x5b   : > { %p19_p8 = scmp.ge.s32.totalorder %s22_s14, 6   ;;  %s1078_s10 = smov %s733_s11 }
  0x5c   : > { %s1079_s11 = smov %s822_s23  ;;  %s1080_s12 = smov %s741_s13 }
  0x5d   : > { %s1081_s13 = smov %s1083_s17  ;;  %21 = sbr.rel (!%p19_p8) target bundleno = 8 (0x8), region = 86 }
  0x62   :  { %426 = vsyncpa [#allocation3], 1 }
  0x63   :  { %428 = vsyncpa [#allocation3 + $0x1], 1 }
  0x64   :  { %429 = vsyncpa [#allocation4], 1 }
  0x65   :  { %431 = vsyncpa [#allocation4 + $0x1], 1 }
  0x66   :  { %432 = vsyncpa [#allocation7], 1 }
  0x67   :  { %434 = vsyncpa [#allocation7 + $0x1], 1 }

</bundles_post_ra>
